<compile_context>
chip_gen: v7x
topology: tpu7x:2x2x1
jax: 0.10.0
libtpu: 0.0.40
codegen_flags: <defaults>
</compile_context>

<pallas_src>
import math

import jax
import jax.numpy as jnp
from jax.experimental import pallas as pl
from jax.experimental.pallas import tpu as pltpu

# Shapes from the module's globals.
B, S, D, H = 2, 10, 6, 2
DK = D // H
_BIAS_ROW = 8          # 8-sublane-aligned row holding the bias inside each slot
_SLOT_ROWS = 16        # sublane-padded rows per packed weight slot


def _mha_kernel(q_ref, k_ref, v_ref, wb_ref, o_ref):
    # q_ref / k_ref / v_ref: (B, S, D) activations (untouched on the host).
    # wb_ref: (2 + 2H, 16, D) packed params in x@W form:
    #   slot 0      : [Wk   ; bk]
    #   slot 1      : [Wo   ; bo]
    #   slot 2 + h  : [Wq_h*s ; bq_h*s]  off-head output columns zeroed, s=1/sqrt(d_k)
    #   slot 2+H + h: [Wv_h   ; bv_h]    off-head output columns zeroed
    # o_ref: (B, S, D)
    nb, s, d = q_ref.shape
    nheads = (wb_ref.shape[0] - 2) // 2

    def wb(i):
        blk = wb_ref[i]                                   # (16, d)
        return blk[:d, :], blk[_BIAS_ROW:_BIAS_ROW + 1, :]

    wk, bk = wb(0)
    wo, bo = wb(1)

    for b in range(nb):                                   # static unrolled (B = 2)
        xq = q_ref[b]                                     # (s, d)
        xk = k_ref[b]
        xv = v_ref[b]

        # Shared K projection for this batch element.
        kp = jnp.dot(xk, wk, preferred_element_type=jnp.float32) + bk

        ctx = jnp.zeros((s, d), jnp.float32)
        for h in range(nheads):                           # static unrolled (H = 2)
            wq_h, bq_h = wb(2 + h)
            wv_h, bv_h = wb(2 + nheads + h)
            # Off-head output columns (and bias entries) of wq_h / wv_h were
            # zeroed at pack time, so qh / vh come pre-masked from the MXU.
            qh = jnp.dot(xq, wq_h, preferred_element_type=jnp.float32) + bq_h
            vh = jnp.dot(xv, wv_h, preferred_element_type=jnp.float32) + bv_h
            # Zeros in qh annihilate off-head terms of the contraction, so kp
            # needs no mask.  1/sqrt(d_k) is already folded into wq_h / bq_h.
            scores = jax.lax.dot_general(qh, kp, (((1,), (1,)), ((), ())),
                                         preferred_element_type=jnp.float32)
            scores = scores - jnp.max(scores, axis=-1, keepdims=True)
            p = jnp.exp(scores)
            p = p / jnp.sum(p, axis=-1, keepdims=True)    # exact softmax denom
            # vh is masked to head-h's columns, so summing over heads
            # reconstructs the concatenated-heads layout directly.
            ctx = ctx + jnp.dot(p, vh, preferred_element_type=jnp.float32)

        o_ref[b] = jnp.dot(ctx, wo, preferred_element_type=jnp.float32) + bo


def pack_params(params):
    """One-time host-side prep: transpose to x@W form, fold 1/sqrt(d_k) and the
    per-head output-column masks into Wq/Wv, and pack weights + biases into one
    (2+2H, 16, D) slab with the bias on the 8-aligned sublane row."""
    wq, bq, wk, bk, wv, bv, wo, bo = params
    scale = 1.0 / math.sqrt(DK)
    col = jnp.arange(D)

    def slot(w_t, b_row):
        blk = jnp.zeros((_SLOT_ROWS, D), jnp.float32)
        blk = blk.at[:D, :].set(w_t)
        blk = blk.at[_BIAS_ROW, :].set(b_row)
        return blk

    slots = [slot(wk.T, bk[0]), slot(wo.T, bo[0])]
    q_slots, v_slots = [], []
    for h in range(H):
        m = (col // DK == h).astype(jnp.float32)          # head-h output columns
        q_slots.append(slot(wq.T * scale * m[None, :], bq[0] * scale * m))
        v_slots.append(slot(wv.T * m[None, :], bv[0] * m))
    return jnp.stack(slots + q_slots + v_slots, axis=0)   # (2 + 2H, 16, D)


def multi_headed_attention(query, key, value, wb_packed):
    n_slots = wb_packed.shape[0]
    return pl.pallas_call(
        _mha_kernel,
        out_shape=jax.ShapeDtypeStruct((B, S, D), jnp.float32),
        grid=(1,),
        in_specs=[pl.BlockSpec((B, S, D), lambda i: (0, 0, 0)),
                  pl.BlockSpec((B, S, D), lambda i: (0, 0, 0)),
                  pl.BlockSpec((B, S, D), lambda i: (0, 0, 0)),
                  pl.BlockSpec((n_slots, _SLOT_ROWS, D), lambda i: (0, 0, 0))],
        out_specs=pl.BlockSpec((B, S, D), lambda i: (0, 0, 0)),
        compiler_params=pltpu.CompilerParams(dimension_semantics=("arbitrary",)),
    )(query, key, value, wb_packed)


def ref_mha(q, k, v, params):
    """Plain-JAX reference mirroring the PyTorch forward exactly."""
    wq, bq, wk, bk, wv, bv, wo, bo = params

    def proj(x, w, b):
        return (x @ w.T + b[0]).reshape(B, S, H, DK).transpose(0, 2, 1, 3)

    qp, kp, vp = proj(q, wq, bq), proj(k, wk, bk), proj(v, wv, bv)
    scores = jnp.einsum("bhqd,bhkd->bhqk", qp, kp) / math.sqrt(DK)
    attn = jax.nn.softmax(scores, axis=-1)
    ctx = jnp.einsum("bhqk,bhkd->bhqd", attn, vp)
    ctx = ctx.transpose(0, 2, 1, 3).reshape(B, S, D)
    return ctx @ wo.T + bo[0]


def init_params(key):
    """Deterministic stand-in for the 4 nn.Linear(d_model, d_model) layers."""
    keys = jax.random.split(key, 8)
    bound = 1.0 / math.sqrt(D)
    params = []
    for i in range(4):
        w = jax.random.uniform(keys[2 * i], (D, D), jnp.float32, -bound, bound)
        b = jax.random.uniform(keys[2 * i + 1], (1, D), jnp.float32, -bound, bound)
        params += [w, b]
    return tuple(params)


if __name__ == "__main__":
    root = jax.random.PRNGKey(0)
    kq, kk, kv, kparam = jax.random.split(root, 4)
    query = jax.random.normal(kq, (B, S, D), jnp.float32)
    key = jax.random.normal(kk, (B, S, D), jnp.float32)
    value = jax.random.normal(kv, (B, S, D), jnp.float32)
    params = init_params(kparam)
    wb_packed = pack_params(params)

    out = multi_headed_attention(query, key, value, wb_packed)
    out = jax.block_until_ready(out)

    ref = ref_mha(query, key, value, params)
    assert out.shape == (B, S, D)
    assert jnp.allclose(out, ref, atol=1e-4, rtol=1e-4), "mismatch vs reference"
    print("KERNEL_OK")
</pallas_src>

<mosaic_0001>
module attributes {stable_mosaic.version = 11 : i64} {
  func.func @_mha_kernel(%arg0: i32, %arg1: memref<2x10x6xf32, #tpu.memory_space<vmem>>, %arg2: memref<2x10x6xf32, #tpu.memory_space<vmem>>, %arg3: memref<2x10x6xf32, #tpu.memory_space<vmem>>, %arg4: memref<6x16x6xf32, #tpu.memory_space<vmem>>, %arg5: memref<2x10x6xf32, #tpu.memory_space<vmem>>) attributes {dimension_semantics = [#tpu.dimension_semantics<arbitrary>], iteration_bounds = array<i64: 1>, scalar_prefetch = 0 : i64, scratch_operands = 0 : i64, tpu.core_type = #tpu.core_type<tc>, window_params = [{pipeline_mode = #tpu.pipeline_mode<synchronous>, transform_indices = @transform_0, window_bounds = array<i64: 2, 10, 6>}, {pipeline_mode = #tpu.pipeline_mode<synchronous>, transform_indices = @transform_1, window_bounds = array<i64: 2, 10, 6>}, {pipeline_mode = #tpu.pipeline_mode<synchronous>, transform_indices = @transform_2, window_bounds = array<i64: 2, 10, 6>}, {pipeline_mode = #tpu.pipeline_mode<synchronous>, transform_indices = @transform_3, window_bounds = array<i64: 6, 16, 6>}, {pipeline_mode = #tpu.pipeline_mode<synchronous>, transform_indices = @transform_4, window_bounds = array<i64: 2, 10, 6>}]} {
    %c0 = arith.constant 0 : index
    %c0_0 = arith.constant 0 : index
    %c0_1 = arith.constant 0 : index
    %0 = vector.load %arg4[%c0, %c0_0, %c0_1] : memref<6x16x6xf32, #tpu.memory_space<vmem>>, vector<1x16x6xf32>
    %1 = vector.shape_cast %0 : vector<1x16x6xf32> to vector<16x6xf32>
    %2 = vector.extract_strided_slice %1 {offsets = [0, 0], sizes = [6, 6], strides = [1, 1]} : vector<16x6xf32> to vector<6x6xf32>
    %3 = vector.extract_strided_slice %1 {offsets = [8, 0], sizes = [1, 6], strides = [1, 1]} : vector<16x6xf32> to vector<1x6xf32>
    %c1 = arith.constant 1 : index
    %c0_2 = arith.constant 0 : index
    %c0_3 = arith.constant 0 : index
    %4 = vector.load %arg4[%c1, %c0_2, %c0_3] : memref<6x16x6xf32, #tpu.memory_space<vmem>>, vector<1x16x6xf32>
    %5 = vector.shape_cast %4 : vector<1x16x6xf32> to vector<16x6xf32>
    %6 = vector.extract_strided_slice %5 {offsets = [0, 0], sizes = [6, 6], strides = [1, 1]} : vector<16x6xf32> to vector<6x6xf32>
    %7 = vector.extract_strided_slice %5 {offsets = [8, 0], sizes = [1, 6], strides = [1, 1]} : vector<16x6xf32> to vector<1x6xf32>
    %c0_4 = arith.constant 0 : index
    %c0_5 = arith.constant 0 : index
    %c0_6 = arith.constant 0 : index
    %8 = vector.load %arg1[%c0_4, %c0_5, %c0_6] : memref<2x10x6xf32, #tpu.memory_space<vmem>>, vector<1x10x6xf32>
    %9 = vector.shape_cast %8 : vector<1x10x6xf32> to vector<10x6xf32>
    %c0_7 = arith.constant 0 : index
    %c0_8 = arith.constant 0 : index
    %c0_9 = arith.constant 0 : index
    %10 = vector.load %arg2[%c0_7, %c0_8, %c0_9] : memref<2x10x6xf32, #tpu.memory_space<vmem>>, vector<1x10x6xf32>
    %11 = vector.shape_cast %10 : vector<1x10x6xf32> to vector<10x6xf32>
    %c0_10 = arith.constant 0 : index
    %c0_11 = arith.constant 0 : index
    %c0_12 = arith.constant 0 : index
    %12 = vector.load %arg3[%c0_10, %c0_11, %c0_12] : memref<2x10x6xf32, #tpu.memory_space<vmem>>, vector<1x10x6xf32>
    %13 = vector.shape_cast %12 : vector<1x10x6xf32> to vector<10x6xf32>
    %cst = arith.constant dense<0.000000e+00> : vector<10x6xf32>
    %14 = tpu.matmul %11, %2, %cst {dimension_numbers = #tpu.dot_dimension_numbers<[1], [0], [0], [1], [0, 0, 1, 1], [], []>} : vector<10x6xf32>, vector<6x6xf32>, vector<10x6xf32> -> vector<10x6xf32>
    %15 = vector.broadcast %3 : vector<1x6xf32> to vector<10x6xf32>
    %16 = arith.addf %14, %15 : vector<10x6xf32>
    %cst_13 = arith.constant 0.000000e+00 : f32
    %17 = vector.broadcast %cst_13 : f32 to vector<10x6xf32>
    %c2 = arith.constant 2 : index
    %c0_14 = arith.constant 0 : index
    %c0_15 = arith.constant 0 : index
    %18 = vector.load %arg4[%c2, %c0_14, %c0_15] : memref<6x16x6xf32, #tpu.memory_space<vmem>>, vector<1x16x6xf32>
    %19 = vector.shape_cast %18 : vector<1x16x6xf32> to vector<16x6xf32>
    %20 = vector.extract_strided_slice %19 {offsets = [0, 0], sizes = [6, 6], strides = [1, 1]} : vector<16x6xf32> to vector<6x6xf32>
    %21 = vector.extract_strided_slice %19 {offsets = [8, 0], sizes = [1, 6], strides = [1, 1]} : vector<16x6xf32> to vector<1x6xf32>
    %c4 = arith.constant 4 : index
    %c0_16 = arith.constant 0 : index
    %c0_17 = arith.constant 0 : index
    %22 = vector.load %arg4[%c4, %c0_16, %c0_17] : memref<6x16x6xf32, #tpu.memory_space<vmem>>, vector<1x16x6xf32>
    %23 = vector.shape_cast %22 : vector<1x16x6xf32> to vector<16x6xf32>
    %24 = vector.extract_strided_slice %23 {offsets = [0, 0], sizes = [6, 6], strides = [1, 1]} : vector<16x6xf32> to vector<6x6xf32>
    %25 = vector.extract_strided_slice %23 {offsets = [8, 0], sizes = [1, 6], strides = [1, 1]} : vector<16x6xf32> to vector<1x6xf32>
    %cst_18 = arith.constant dense<0.000000e+00> : vector<10x6xf32>
    %26 = tpu.matmul %9, %20, %cst_18 {dimension_numbers = #tpu.dot_dimension_numbers<[1], [0], [0], [1], [0, 0, 1, 1], [], []>} : vector<10x6xf32>, vector<6x6xf32>, vector<10x6xf32> -> vector<10x6xf32>
    %27 = vector.broadcast %21 : vector<1x6xf32> to vector<10x6xf32>
    %28 = arith.addf %26, %27 : vector<10x6xf32>
    %cst_19 = arith.constant dense<0.000000e+00> : vector<10x6xf32>
    %29 = tpu.matmul %13, %24, %cst_19 {dimension_numbers = #tpu.dot_dimension_numbers<[1], [0], [0], [1], [0, 0, 1, 1], [], []>} : vector<10x6xf32>, vector<6x6xf32>, vector<10x6xf32> -> vector<10x6xf32>
    %30 = vector.broadcast %25 : vector<1x6xf32> to vector<10x6xf32>
    %31 = arith.addf %29, %30 : vector<10x6xf32>
    %cst_20 = arith.constant dense<0.000000e+00> : vector<10x10xf32>
    %32 = tpu.matmul %28, %16, %cst_20 {dimension_numbers = #tpu.dot_dimension_numbers<[1], [1], [0], [0], [0, 0, 1, 0], [], []>} : vector<10x6xf32>, vector<10x6xf32>, vector<10x10xf32> -> vector<10x10xf32>
    %cst_21 = arith.constant dense<0xFF800000> : vector<10xf32>
    %33 = vector.multi_reduction <maximumf>, %32, %cst_21 [1] : vector<10x10xf32> to vector<10xf32>
    %34 = vector.shape_cast %33 : vector<10xf32> to vector<10x1xf32>
    %35 = vector.broadcast %34 : vector<10x1xf32> to vector<10x10xf32>
    %36 = arith.subf %32, %35 : vector<10x10xf32>
    %37 = math.exp %36 : vector<10x10xf32>
    %cst_22 = arith.constant dense<0.000000e+00> : vector<10xf32>
    %38 = vector.multi_reduction <add>, %37, %cst_22 [1] : vector<10x10xf32> to vector<10xf32>
    %39 = vector.shape_cast %38 : vector<10xf32> to vector<10x1xf32>
    %40 = vector.broadcast %39 : vector<10x1xf32> to vector<10x10xf32>
    %41 = arith.divf %37, %40 : vector<10x10xf32>
    %cst_23 = arith.constant dense<0.000000e+00> : vector<10x6xf32>
    %42 = tpu.matmul %41, %31, %cst_23 {dimension_numbers = #tpu.dot_dimension_numbers<[1], [0], [0], [1], [0, 0, 1, 1], [], []>} : vector<10x10xf32>, vector<10x6xf32>, vector<10x6xf32> -> vector<10x6xf32>
    %43 = arith.addf %17, %42 : vector<10x6xf32>
    %c3 = arith.constant 3 : index
    %c0_24 = arith.constant 0 : index
    %c0_25 = arith.constant 0 : index
    %44 = vector.load %arg4[%c3, %c0_24, %c0_25] : memref<6x16x6xf32, #tpu.memory_space<vmem>>, vector<1x16x6xf32>
    %45 = vector.shape_cast %44 : vector<1x16x6xf32> to vector<16x6xf32>
    %46 = vector.extract_strided_slice %45 {offsets = [0, 0], sizes = [6, 6], strides = [1, 1]} : vector<16x6xf32> to vector<6x6xf32>
    %47 = vector.extract_strided_slice %45 {offsets = [8, 0], sizes = [1, 6], strides = [1, 1]} : vector<16x6xf32> to vector<1x6xf32>
    %c5 = arith.constant 5 : index
    %c0_26 = arith.constant 0 : index
    %c0_27 = arith.constant 0 : index
    %48 = vector.load %arg4[%c5, %c0_26, %c0_27] : memref<6x16x6xf32, #tpu.memory_space<vmem>>, vector<1x16x6xf32>
    %49 = vector.shape_cast %48 : vector<1x16x6xf32> to vector<16x6xf32>
    %50 = vector.extract_strided_slice %49 {offsets = [0, 0], sizes = [6, 6], strides = [1, 1]} : vector<16x6xf32> to vector<6x6xf32>
    %51 = vector.extract_strided_slice %49 {offsets = [8, 0], sizes = [1, 6], strides = [1, 1]} : vector<16x6xf32> to vector<1x6xf32>
    %cst_28 = arith.constant dense<0.000000e+00> : vector<10x6xf32>
    %52 = tpu.matmul %9, %46, %cst_28 {dimension_numbers = #tpu.dot_dimension_numbers<[1], [0], [0], [1], [0, 0, 1, 1], [], []>} : vector<10x6xf32>, vector<6x6xf32>, vector<10x6xf32> -> vector<10x6xf32>
    %53 = vector.broadcast %47 : vector<1x6xf32> to vector<10x6xf32>
    %54 = arith.addf %52, %53 : vector<10x6xf32>
    %cst_29 = arith.constant dense<0.000000e+00> : vector<10x6xf32>
    %55 = tpu.matmul %13, %50, %cst_29 {dimension_numbers = #tpu.dot_dimension_numbers<[1], [0], [0], [1], [0, 0, 1, 1], [], []>} : vector<10x6xf32>, vector<6x6xf32>, vector<10x6xf32> -> vector<10x6xf32>
    %56 = vector.broadcast %51 : vector<1x6xf32> to vector<10x6xf32>
    %57 = arith.addf %55, %56 : vector<10x6xf32>
    %cst_30 = arith.constant dense<0.000000e+00> : vector<10x10xf32>
    %58 = tpu.matmul %54, %16, %cst_30 {dimension_numbers = #tpu.dot_dimension_numbers<[1], [1], [0], [0], [0, 0, 1, 0], [], []>} : vector<10x6xf32>, vector<10x6xf32>, vector<10x10xf32> -> vector<10x10xf32>
    %cst_31 = arith.constant dense<0xFF800000> : vector<10xf32>
    %59 = vector.multi_reduction <maximumf>, %58, %cst_31 [1] : vector<10x10xf32> to vector<10xf32>
    %60 = vector.shape_cast %59 : vector<10xf32> to vector<10x1xf32>
    %61 = vector.broadcast %60 : vector<10x1xf32> to vector<10x10xf32>
    %62 = arith.subf %58, %61 : vector<10x10xf32>
    %63 = math.exp %62 : vector<10x10xf32>
    %cst_32 = arith.constant dense<0.000000e+00> : vector<10xf32>
    %64 = vector.multi_reduction <add>, %63, %cst_32 [1] : vector<10x10xf32> to vector<10xf32>
    %65 = vector.shape_cast %64 : vector<10xf32> to vector<10x1xf32>
    %66 = vector.broadcast %65 : vector<10x1xf32> to vector<10x10xf32>
    %67 = arith.divf %63, %66 : vector<10x10xf32>
    %cst_33 = arith.constant dense<0.000000e+00> : vector<10x6xf32>
    %68 = tpu.matmul %67, %57, %cst_33 {dimension_numbers = #tpu.dot_dimension_numbers<[1], [0], [0], [1], [0, 0, 1, 1], [], []>} : vector<10x10xf32>, vector<10x6xf32>, vector<10x6xf32> -> vector<10x6xf32>
    %69 = arith.addf %43, %68 : vector<10x6xf32>
    %cst_34 = arith.constant dense<0.000000e+00> : vector<10x6xf32>
    %70 = tpu.matmul %69, %6, %cst_34 {dimension_numbers = #tpu.dot_dimension_numbers<[1], [0], [0], [1], [0, 0, 1, 1], [], []>} : vector<10x6xf32>, vector<6x6xf32>, vector<10x6xf32> -> vector<10x6xf32>
    %71 = vector.broadcast %7 : vector<1x6xf32> to vector<10x6xf32>
    %72 = arith.addf %70, %71 : vector<10x6xf32>
    %c0_35 = arith.constant 0 : index
    %c0_36 = arith.constant 0 : index
    %c0_37 = arith.constant 0 : index
    %73 = vector.load %arg5[%c0_35, %c0_36, %c0_37] : memref<2x10x6xf32, #tpu.memory_space<vmem>>, vector<1x10x6xf32>
    %74 = vector.shape_cast %73 : vector<1x10x6xf32> to vector<10x6xf32>
    %75 = vector.shape_cast %72 : vector<10x6xf32> to vector<1x10x6xf32>
    tpu.vector_store %arg5[%c0_35, %c0_36, %c0_37], %75 {strides = array<i32>} : memref<2x10x6xf32, #tpu.memory_space<vmem>>, vector<1x10x6xf32>,
    %c1_38 = arith.constant 1 : index
    %c0_39 = arith.constant 0 : index
    %c0_40 = arith.constant 0 : index
    %76 = vector.load %arg1[%c1_38, %c0_39, %c0_40] : memref<2x10x6xf32, #tpu.memory_space<vmem>>, vector<1x10x6xf32>
    %77 = vector.shape_cast %76 : vector<1x10x6xf32> to vector<10x6xf32>
    %c1_41 = arith.constant 1 : index
    %c0_42 = arith.constant 0 : index
    %c0_43 = arith.constant 0 : index
    %78 = vector.load %arg2[%c1_41, %c0_42, %c0_43] : memref<2x10x6xf32, #tpu.memory_space<vmem>>, vector<1x10x6xf32>
    %79 = vector.shape_cast %78 : vector<1x10x6xf32> to vector<10x6xf32>
    %c1_44 = arith.constant 1 : index
    %c0_45 = arith.constant 0 : index
    %c0_46 = arith.constant 0 : index
    %80 = vector.load %arg3[%c1_44, %c0_45, %c0_46] : memref<2x10x6xf32, #tpu.memory_space<vmem>>, vector<1x10x6xf32>
    %81 = vector.shape_cast %80 : vector<1x10x6xf32> to vector<10x6xf32>
    %cst_47 = arith.constant dense<0.000000e+00> : vector<10x6xf32>
    %82 = tpu.matmul %79, %2, %cst_47 {dimension_numbers = #tpu.dot_dimension_numbers<[1], [0], [0], [1], [0, 0, 1, 1], [], []>} : vector<10x6xf32>, vector<6x6xf32>, vector<10x6xf32> -> vector<10x6xf32>
    %83 = vector.broadcast %3 : vector<1x6xf32> to vector<10x6xf32>
    %84 = arith.addf %82, %83 : vector<10x6xf32>
    %cst_48 = arith.constant 0.000000e+00 : f32
    %85 = vector.broadcast %cst_48 : f32 to vector<10x6xf32>
    %c2_49 = arith.constant 2 : index
    %c0_50 = arith.constant 0 : index
    %c0_51 = arith.constant 0 : index
    %86 = vector.load %arg4[%c2_49, %c0_50, %c0_51] : memref<6x16x6xf32, #tpu.memory_space<vmem>>, vector<1x16x6xf32>
    %87 = vector.shape_cast %86 : vector<1x16x6xf32> to vector<16x6xf32>
    %88 = vector.extract_strided_slice %87 {offsets = [0, 0], sizes = [6, 6], strides = [1, 1]} : vector<16x6xf32> to vector<6x6xf32>
    %89 = vector.extract_strided_slice %87 {offsets = [8, 0], sizes = [1, 6], strides = [1, 1]} : vector<16x6xf32> to vector<1x6xf32>
    %c4_52 = arith.constant 4 : index
    %c0_53 = arith.constant 0 : index
    %c0_54 = arith.constant 0 : index
    %90 = vector.load %arg4[%c4_52, %c0_53, %c0_54] : memref<6x16x6xf32, #tpu.memory_space<vmem>>, vector<1x16x6xf32>
    %91 = vector.shape_cast %90 : vector<1x16x6xf32> to vector<16x6xf32>
    %92 = vector.extract_strided_slice %91 {offsets = [0, 0], sizes = [6, 6], strides = [1, 1]} : vector<16x6xf32> to vector<6x6xf32>
    %93 = vector.extract_strided_slice %91 {offsets = [8, 0], sizes = [1, 6], strides = [1, 1]} : vector<16x6xf32> to vector<1x6xf32>
    %cst_55 = arith.constant dense<0.000000e+00> : vector<10x6xf32>
    %94 = tpu.matmul %77, %88, %cst_55 {dimension_numbers = #tpu.dot_dimension_numbers<[1], [0], [0], [1], [0, 0, 1, 1], [], []>} : vector<10x6xf32>, vector<6x6xf32>, vector<10x6xf32> -> vector<10x6xf32>
    %95 = vector.broadcast %89 : vector<1x6xf32> to vector<10x6xf32>
    %96 = arith.addf %94, %95 : vector<10x6xf32>
    %cst_56 = arith.constant dense<0.000000e+00> : vector<10x6xf32>
    %97 = tpu.matmul %81, %92, %cst_56 {dimension_numbers = #tpu.dot_dimension_numbers<[1], [0], [0], [1], [0, 0, 1, 1], [], []>} : vector<10x6xf32>, vector<6x6xf32>, vector<10x6xf32> -> vector<10x6xf32>
    %98 = vector.broadcast %93 : vector<1x6xf32> to vector<10x6xf32>
    %99 = arith.addf %97, %98 : vector<10x6xf32>
    %cst_57 = arith.constant dense<0.000000e+00> : vector<10x10xf32>
    %100 = tpu.matmul %96, %84, %cst_57 {dimension_numbers = #tpu.dot_dimension_numbers<[1], [1], [0], [0], [0, 0, 1, 0], [], []>} : vector<10x6xf32>, vector<10x6xf32>, vector<10x10xf32> -> vector<10x10xf32>
    %cst_58 = arith.constant dense<0xFF800000> : vector<10xf32>
    %101 = vector.multi_reduction <maximumf>, %100, %cst_58 [1] : vector<10x10xf32> to vector<10xf32>
    %102 = vector.shape_cast %101 : vector<10xf32> to vector<10x1xf32>
    %103 = vector.broadcast %102 : vector<10x1xf32> to vector<10x10xf32>
    %104 = arith.subf %100, %103 : vector<10x10xf32>
    %105 = math.exp %104 : vector<10x10xf32>
    %cst_59 = arith.constant dense<0.000000e+00> : vector<10xf32>
    %106 = vector.multi_reduction <add>, %105, %cst_59 [1] : vector<10x10xf32> to vector<10xf32>
    %107 = vector.shape_cast %106 : vector<10xf32> to vector<10x1xf32>
    %108 = vector.broadcast %107 : vector<10x1xf32> to vector<10x10xf32>
    %109 = arith.divf %105, %108 : vector<10x10xf32>
    %cst_60 = arith.constant dense<0.000000e+00> : vector<10x6xf32>
    %110 = tpu.matmul %109, %99, %cst_60 {dimension_numbers = #tpu.dot_dimension_numbers<[1], [0], [0], [1], [0, 0, 1, 1], [], []>} : vector<10x10xf32>, vector<10x6xf32>, vector<10x6xf32> -> vector<10x6xf32>
    %111 = arith.addf %85, %110 : vector<10x6xf32>
    %c3_61 = arith.constant 3 : index
    %c0_62 = arith.constant 0 : index
    %c0_63 = arith.constant 0 : index
    %112 = vector.load %arg4[%c3_61, %c0_62, %c0_63] : memref<6x16x6xf32, #tpu.memory_space<vmem>>, vector<1x16x6xf32>
    %113 = vector.shape_cast %112 : vector<1x16x6xf32> to vector<16x6xf32>
    %114 = vector.extract_strided_slice %113 {offsets = [0, 0], sizes = [6, 6], strides = [1, 1]} : vector<16x6xf32> to vector<6x6xf32>
    %115 = vector.extract_strided_slice %113 {offsets = [8, 0], sizes = [1, 6], strides = [1, 1]} : vector<16x6xf32> to vector<1x6xf32>
    %c5_64 = arith.constant 5 : index
    %c0_65 = arith.constant 0 : index
    %c0_66 = arith.constant 0 : index
    %116 = vector.load %arg4[%c5_64, %c0_65, %c0_66] : memref<6x16x6xf32, #tpu.memory_space<vmem>>, vector<1x16x6xf32>
    %117 = vector.shape_cast %116 : vector<1x16x6xf32> to vector<16x6xf32>
    %118 = vector.extract_strided_slice %117 {offsets = [0, 0], sizes = [6, 6], strides = [1, 1]} : vector<16x6xf32> to vector<6x6xf32>
    %119 = vector.extract_strided_slice %117 {offsets = [8, 0], sizes = [1, 6], strides = [1, 1]} : vector<16x6xf32> to vector<1x6xf32>
    %cst_67 = arith.constant dense<0.000000e+00> : vector<10x6xf32>
    %120 = tpu.matmul %77, %114, %cst_67 {dimension_numbers = #tpu.dot_dimension_numbers<[1], [0], [0], [1], [0, 0, 1, 1], [], []>} : vector<10x6xf32>, vector<6x6xf32>, vector<10x6xf32> -> vector<10x6xf32>
    %121 = vector.broadcast %115 : vector<1x6xf32> to vector<10x6xf32>
    %122 = arith.addf %120, %121 : vector<10x6xf32>
    %cst_68 = arith.constant dense<0.000000e+00> : vector<10x6xf32>
    %123 = tpu.matmul %81, %118, %cst_68 {dimension_numbers = #tpu.dot_dimension_numbers<[1], [0], [0], [1], [0, 0, 1, 1], [], []>} : vector<10x6xf32>, vector<6x6xf32>, vector<10x6xf32> -> vector<10x6xf32>
    %124 = vector.broadcast %119 : vector<1x6xf32> to vector<10x6xf32>
    %125 = arith.addf %123, %124 : vector<10x6xf32>
    %cst_69 = arith.constant dense<0.000000e+00> : vector<10x10xf32>
    %126 = tpu.matmul %122, %84, %cst_69 {dimension_numbers = #tpu.dot_dimension_numbers<[1], [1], [0], [0], [0, 0, 1, 0], [], []>} : vector<10x6xf32>, vector<10x6xf32>, vector<10x10xf32> -> vector<10x10xf32>
    %cst_70 = arith.constant dense<0xFF800000> : vector<10xf32>
    %127 = vector.multi_reduction <maximumf>, %126, %cst_70 [1] : vector<10x10xf32> to vector<10xf32>
    %128 = vector.shape_cast %127 : vector<10xf32> to vector<10x1xf32>
    %129 = vector.broadcast %128 : vector<10x1xf32> to vector<10x10xf32>
    %130 = arith.subf %126, %129 : vector<10x10xf32>
    %131 = math.exp %130 : vector<10x10xf32>
    %cst_71 = arith.constant dense<0.000000e+00> : vector<10xf32>
    %132 = vector.multi_reduction <add>, %131, %cst_71 [1] : vector<10x10xf32> to vector<10xf32>
    %133 = vector.shape_cast %132 : vector<10xf32> to vector<10x1xf32>
    %134 = vector.broadcast %133 : vector<10x1xf32> to vector<10x10xf32>
    %135 = arith.divf %131, %134 : vector<10x10xf32>
    %cst_72 = arith.constant dense<0.000000e+00> : vector<10x6xf32>
    %136 = tpu.matmul %135, %125, %cst_72 {dimension_numbers = #tpu.dot_dimension_numbers<[1], [0], [0], [1], [0, 0, 1, 1], [], []>} : vector<10x10xf32>, vector<10x6xf32>, vector<10x6xf32> -> vector<10x6xf32>
    %137 = arith.addf %111, %136 : vector<10x6xf32>
    %cst_73 = arith.constant dense<0.000000e+00> : vector<10x6xf32>
    %138 = tpu.matmul %137, %6, %cst_73 {dimension_numbers = #tpu.dot_dimension_numbers<[1], [0], [0], [1], [0, 0, 1, 1], [], []>} : vector<10x6xf32>, vector<6x6xf32>, vector<10x6xf32> -> vector<10x6xf32>
    %139 = vector.broadcast %7 : vector<1x6xf32> to vector<10x6xf32>
    %140 = arith.addf %138, %139 : vector<10x6xf32>
    %c1_74 = arith.constant 1 : index
    %c0_75 = arith.constant 0 : index
    %c0_76 = arith.constant 0 : index
    %141 = vector.load %arg5[%c1_74, %c0_75, %c0_76] : memref<2x10x6xf32, #tpu.memory_space<vmem>>, vector<1x10x6xf32>
    %142 = vector.shape_cast %141 : vector<1x10x6xf32> to vector<10x6xf32>
    %143 = vector.shape_cast %140 : vector<10x6xf32> to vector<1x10x6xf32>
    tpu.vector_store %arg5[%c1_74, %c0_75, %c0_76], %143 {strides = array<i32>} : memref<2x10x6xf32, #tpu.memory_space<vmem>>, vector<1x10x6xf32>,
    return
  }
  func.func @transform_0(%arg0: i32) -> (i32, i32, i32) {
    %c0_i32 = arith.constant 0 : i32
    %c0_i32_0 = arith.constant 0 : i32
    %c0_i32_1 = arith.constant 0 : i32
    %c0_i32_2 = arith.constant 0 : i32
    return %c0_i32, %c0_i32_0, %c0_i32_1 : i32, i32, i32
  }
  func.func @transform_1(%arg0: i32) -> (i32, i32, i32) {
    %c0_i32 = arith.constant 0 : i32
    %c0_i32_0 = arith.constant 0 : i32
    %c0_i32_1 = arith.constant 0 : i32
    %c0_i32_2 = arith.constant 0 : i32
    return %c0_i32, %c0_i32_0, %c0_i32_1 : i32, i32, i32
  }
  func.func @transform_2(%arg0: i32) -> (i32, i32, i32) {
    %c0_i32 = arith.constant 0 : i32
    %c0_i32_0 = arith.constant 0 : i32
    %c0_i32_1 = arith.constant 0 : i32
    %c0_i32_2 = arith.constant 0 : i32
    return %c0_i32, %c0_i32_0, %c0_i32_1 : i32, i32, i32
  }
  func.func @transform_3(%arg0: i32) -> (i32, i32, i32) {
    %c0_i32 = arith.constant 0 : i32
    %c0_i32_0 = arith.constant 0 : i32
    %c0_i32_1 = arith.constant 0 : i32
    %c0_i32_2 = arith.constant 0 : i32
    return %c0_i32, %c0_i32_0, %c0_i32_1 : i32, i32, i32
  }
  func.func @transform_4(%arg0: i32) -> (i32, i32, i32) {
    %c0_i32 = arith.constant 0 : i32
    %c0_i32_0 = arith.constant 0 : i32
    %c0_i32_1 = arith.constant 0 : i32
    %c0_i32_2 = arith.constant 0 : i32
    return %c0_i32, %c0_i32_0, %c0_i32_1 : i32, i32, i32
  }
}

</mosaic_0001>

<bundles_post_ra>
// kernel: tpu_custom_call.1
= control target key start
LH: loop header
LB: loop body
LE: loop exit
PB: predicated region body
PF: predicated region fallthrough
CT: control target
= control target key end

     0   :  { %vm39_vm0 = vcmask 1045504   ;;  %vm32_vm1 = vcmask 48128   ;;  %v28_v11 = vlaneseq  ;;  %vm690_vm3 = vcmask 1041408   ;;  %s2533_s3 = inlined_call_operand.vmem [shape: f32[6,16,6], index: 3, kind: input, shape index: {}]   ;;  %s2534_s1 = inlined_call_operand.vmem [shape: f32[2,10,6], index: 1, kind: input, shape index: {}]   ;;  %s2535_s2 = inlined_call_operand.vmem [shape: f32[2,10,6], index: 2, kind: input, shape index: {}]   ;;  %s2536_s0 = inlined_call_operand.vmem [shape: f32[2,10,6], index: 0, kind: input, shape index: {}]   ;;  %s2537_s4 = inlined_call_operand.vmem [shape: f32[2,10,6], index: 4, kind: output, shape index: {}]  }
   0x1   :  { %v2238_v0 = vld [vmem:[%s2533_s3] sm:$0xff]  ;;  %v25_v2 = vld [vmem:[%s2534_s1 + $0x8] sm:$0x3]  ;;  %v2262_v5 = vld [vmem:[%s2533_s3 + $0x30] sm:$0xff]  ;;  %vm2209_vm4 = vmmov 1   ;;  %vm387_vm6 = vcmask 80896  }
   0x2   :  { %v24_v1 = vld [vmem:[%s2534_s1] sm:$0xff]  ;;  %2008 = vmatprep.subr.msk.mxu0 %vm39_vm0, %v2238_v0  ;;  %v27_v8 = vld [vmem:[%s2535_s2 + $0x8] sm:$0x3]  ;;  %v2294_v10 = vld [vmem:[%s2533_s3 + $0x50] sm:$0xff]  ;;  %v29_v12 = vshrl.u32 %v28_v11, 7  ;;  %vm391_vm7 = vcmask 74752  }
   0x3   :  { %2010 = vmatprep.mubr.msk.f32.mxu0 %vm32_vm1, %v24_v1  ;;  %v2252_v3 = vld [vmem:[%s2533_s3 + $0x40] sm:$0xff]  ;;  %2009 = vmatpush3.msk.msra.mxu0 %vm39_vm0, %v2238_v0  ;;  %v23_v9 = vld [vmem:[%s2536_s0 + $0x8] sm:$0x3]  ;;  %vm2332_vm2 = vmpackc.low %vm32_vm1, %vm32_vm1  ;;  %vm942_vm8 = vcmask 41984  }
   0x4   :  { %v26_v4 = vld [vmem:[%s2535_s2] sm:$0xff]  ;;  %2011 = vmatmul.mubr.msk.f32.vlgmr.msra.gmra.mrb[0].mxu0 %vm32_vm1, %v25_v2  ;;  %2018 = vmatprep.subr.msk.mxu0 %vm39_vm0, %v2252_v3  ;;  %v2308_v13 = vsub.s32 0, %v29_v12  ;;  %v18_v14 = vld [vmem:[%s2533_s3 + $0x8] sm:$0xff]  ;;  %v1870_v28 = vld [vmem:[%s2533_s3 + $0x38] sm:$0xff] }
   0x5   :  { %v2267_v6 = vld [vmem:[%s2533_s3 + $0x20] sm:$0xff]  ;;  %2019 = vmatpush3.msk.msra.mxu0 %vm39_vm0, %v2252_v3  ;;  %2020 = vmatprep.mubr.msk.f32.mxu0 %vm32_vm1, %v26_v4  ;;  %v1858_v16 = vld [vmem:[%s2533_s3 + $0x48] sm:$0xff]  ;;  %v1872_v34 = vld [vmem:[%s2533_s3 + $0x58] sm:$0xff] }
   0x6   :  { %v22_v7 = vld [vmem:[%s2536_s0] sm:$0xff]  ;;  %2030 = vmatprep.subr.msk.mxu0 %vm39_vm0, %v2262_v5  ;;  %2013 = vmatprep.subr.msk.mxu1 %vm39_vm0, %v2267_v6  ;;  %v2314_v15 = vrot.slane %v18_v14, %v2308_v13  ;;  %v1856_v17 = vld [vmem:[%s2533_s3 + $0x28] sm:$0xff]  ;;  %v2324_v21 = vrot.slane %v1858_v16, %v2308_v13  ;;  %v2350_v35 = vrot.slane %v1870_v28, %v2308_v13  ;;  %vm2367_vm5 = vmpackc.low %vm690_vm3, %vm2209_vm4 }
   0x7   :  { %2014 = vmatpush3.msk.msra.mxu1 %vm39_vm0, %v2267_v6  ;;  %2015 = vmatprep.mubr.msk.f32.mxu1 %vm32_vm1, %v22_v7  ;;  %v2328_v23 = vrot.slane %v1856_v17, %v2308_v13  ;;  %v2358_v39 = vrot.slane %v1872_v34, %v2308_v13 }
   0x8   :  { %2021 = vmatmul.mubr.msk.f32.vlgmr.msra.gmra.mrb[2].mxu0 %vm32_vm1, %v27_v8  ;;  %2016 = vmatmul.mubr.msk.f32.vlgmr.msra.gmra.mrb[0].mxu1 %vm32_vm1, %v23_v9 }
   0x9   :  { %2031 = vmatpush3.msk.msra.mxu0 %vm39_vm0, %v2262_v5  ;;  %2032 = vmatprep.mubr.msk.f32.mxu0 %vm32_vm1, %v22_v7 }
   0xa   :  { %2035 = vmatprep.subr.msk.mxu0 %vm39_vm0, %v2294_v10 }
   0xc   :  { %2033 = vmatmul.mubr.msk.f32.vlgmr.msra.gmra.mrb[4].mxu0 %vm32_vm1, %v23_v9 }
   0xd   :  { %2036 = vmatpush3.msk.msra.mxu0 %vm39_vm0, %v2294_v10  ;;  %2037 = vmatprep.mubr.msk.f32.mxu0 %vm32_vm1, %v26_v4 }
  0x10   :  { %2038 = vmatmul.mubr.msk.f32.vlgmr.msra.gmra.mrb[6].mxu0 %vm32_vm1, %v27_v8 }
  0xd7   :  { %v2012_v18 = vpop.f32.mrb[0].mxu0 }
  0xd8   :  { %v115_v19 = vadd.f32 %v2012_v18, %v2314_v15  ;;  %v109_v20 = vpop.f32.mrb[1].mxu0 }
  0xd9   :  { %v110_v22 = vadd.f32 %v109_v20, %v2314_v15  ;;  %v2392_v20 = vld [vmem:[%s2533_s3 + $0x10] sm:$0xff] }
  0xdb   :  { %v2124_v25 = vpack.c.bf16 %v115_v19, %v110_v22  ;;  %v2022_v26 = vpop.f32.mrb[2].mxu0  ;;  %v2017_v27 = vpop.f32.mrb[0].mxu1 }
  0xdc   :  { %v297_v29 = vadd.f32 %v2022_v26, %v2324_v21  ;;  %v291_v30 = vpop.f32.mrb[3].mxu0  ;;  %v203_v31 = vpop.f32.mrb[1].mxu1  ;;  %v209_v40 = vadd.f32 %v2017_v27, %v2328_v23 }
  0xdd   :  { %2126 = vmatprep.subr.msk.bf16.mxu1 %vm2332_vm2, %v2124_v25  ;;  %v292_v32 = vadd.f32 %v291_v30, %v2324_v21  ;;  %v204_v33 = vadd.f32 %v203_v31, %v2328_v23 }
  0xde   :  { %2129 = vmatpush3.bf16.xpose.msk.msra.mxu1 %vm2332_vm2, %v2124_v25 }
  0xdf   :  { %2132 = vmatprep.subr.msk.bf16.mxu1 %vm2332_vm2, %v2124_v25  ;;  %v2354_v36 = vpack.c.bf16 %v297_v29, %v292_v32  ;;  %v2034_v37 = vpop.f32.mrb[4].mxu0  ;;  %2027 = vmatprep.mubr.msk.f32.mxu1 %vm32_vm1, %v204_v33 }
  0xe0   :  { %v490_v38 = vpop.f32.mrb[5].mxu0  ;;  %v496_v48 = vadd.f32 %v2034_v37, %v2350_v35 }
  0xe1   :  { %v491_v41 = vadd.f32 %v490_v38, %v2350_v35  ;;  %v1894_v38 = vld [vmem:[%s2534_s1 + $0x10] sm:$0xff] }
  0xe3   :  { %v2039_v42 = vpop.f32.mrb[6].mxu0 }
  0xe4   :  { %v578_v43 = vadd.f32 %v2039_v42, %v2358_v39  ;;  %v572_v44 = vpop.f32.mrb[7].mxu0 }
  0xe5   :  { %v573_v45 = vadd.f32 %v572_v44, %v2358_v39  ;;  %2028 = vmatmul.mubr.msk.f32.vlgmr.msra.gmra.mrb[2].mxu1 %vm32_vm1, %v209_v40  ;;  %v1896_v40 = vld [vmem:[%s2535_s2 + $0x10] sm:$0xff] }
  0xe6   :  { %2135 = vmatpush3.bf16.xpose.msk.msra.mxu1 %vm2332_vm2, %v2124_v25  ;;  %2044 = vmatprep.mubr.msk.f32.mxu1 %vm32_vm1, %v491_v41  ;;  %v1893_v41 = vld [vmem:[%s2536_s0 + $0x18] sm:$0x3] }
  0xe7   :  { %v2136_v47 = vpack.c.bf16 %v578_v43, %v573_v45  ;;  %2061 = vmatprep.subr.msk.mxu1 %vm39_vm0, %v2392_v20 }
  0xe9   :  { %2138 = vmatprep.subr.msk.bf16.mxu0 %vm2367_vm5, %v2136_v47 }
  0xea   :  { %2141 = vmatpush3.bf16.msk.msra.mxu0 %vm2367_vm5, %v2136_v47 }
  0xeb   :  { %2144 = vmatprep.subr.msk.bf16.mxu0 %vm2367_vm5, %v2354_v36 }
  0xed   :  { %2045 = vmatmul.mubr.msk.f32.vlgmr.msra.gmra.mrb[4].mxu1 %vm32_vm1, %v496_v48 }
  0xee   :  { %2062 = vmatpush3.msk.msra.mxu1 %vm39_vm0, %v2392_v20 }
  0xef   :  { %2071 = vmatprep.subr.msk.mxu1 %vm39_vm0, %v2267_v6 }
 0x1b8   :  { %v2029_v49 = vpop.f32.mrb[2].mxu1 }
 0x1b9   :  { %v378_v50 = vpop.f32.mrb[3].mxu1  ;;  %v392_v52 = vsel %vm391_vm7, %v2029_v49, -inf }
 0x1ba   :  { %v388_v51 = vsel %vm387_vm6, %v378_v50, -inf }
 0x1bb   :  { %389 = vmax.xlane.f32.xlu1 %v388_v51 }
 0x1bf   :  { %393 = vmax.xlane.f32.xlu1 %v392_v52 }
 0x1c0   :  { %v2046_v53 = vpop.f32.mrb[4].mxu1 }
 0x1c1   :  { %v653_v54 = vpop.f32.mrb[5].mxu1  ;;  %v665_v56 = vsel %vm391_vm7, %v2046_v53, -inf }
 0x1c2   :  { %v662_v55 = vsel %vm387_vm6, %v653_v54, -inf }
 0x1c3   :  { %663 = vmax.xlane.f32.xlu0 %v662_v55 }
 0x1c7   :  { %666 = vmax.xlane.f32.xlu0 %v665_v56 }
 0x248   :  { %v390_v57 = vpop.xlane.xlu1 %389 }
 0x249   :  { %v395_v58 = vsub.f32 %v378_v50, %v390_v57 }
 0x24b   :  { %v397_v62 = vmul.f32 1.442695, %v395_v58 }
 0x24c   :  { %v394_v59 = vpop.xlane.xlu1 %393 }
 0x24d   :  { %v396_v63 = vsub.f32 %v2029_v49, %v394_v59 }
 0x24f   :  { %v399_v7 = vmul.f32 1.442695, %v396_v63 }
 0x250   :  { %v664_v60 = vpop.xlane.xlu0 %663 }
 0x251   :  { %v668_v61 = vsub.f32 %v653_v54, %v664_v60 }
 0x253   :  { %v670_v1 = vmul.f32 1.442695, %v668_v61 }
 0x254   :  { %v667_v2 = vpop.xlane.xlu0 %666 }
 0x255   :  { %2177 = vpow2.f32 %v670_v1  ;;  %v669_v4 = vsub.f32 %v2046_v53, %v667_v2 }
 0x256   :  { %2179 = vpow2.f32 %v397_v62 }
 0x257   :  { %v672_v8 = vmul.f32 1.442695, %v669_v4 }
 0x259   :  { %2181 = vpow2.f32 %v672_v8 }
 0x25a   :  { %2183 = vpow2.f32 %v399_v7 }
 0x25f   :  { %v2178_v9 = vpop.eup %2177 }
 0x260   :  { %v674_v11 = vsel %vm387_vm6, %v2178_v9, 0.0  ;;  %v2180_v12 = vpop.eup %2179 }
 0x261   :  { %675 = vadd.xlane.f32.xlu0 %v674_v11  ;;  %v401_v17 = vsel %vm387_vm6, %v2180_v12, 0.0 }
 0x263   :  { %v2182_v14 = vpop.eup %2181 }
 0x264   :  { %v677_v16 = vsel %vm391_vm7, %v2182_v14, 0.0  ;;  %v2184_v18 = vpop.eup %2183 }
 0x265   :  { %678 = vadd.xlane.f32.xlu1 %v677_v16  ;;  %402 = vadd.xlane.f32.xlu0 %v401_v17  ;;  %v404_v19 = vsel %vm391_vm7, %v2184_v18, 0.0 }
 0x269   :  { %405 = vadd.xlane.f32.xlu1 %v404_v19 }
 0x2ee   :  { %v676_v22 = vpop.xlane.xlu0 %675 }
 0x2ef   :  { %2185 = vrcp.f32 %v676_v22 }
 0x2f2   :  { %v403_v25 = vpop.xlane.xlu0 %402  ;;  %v679_v26 = vpop.xlane.xlu1 %678 }
 0x2f3   :  { %2187 = vrcp.f32 %v403_v25 }
 0x2f4   :  { %2189 = vrcp.f32 %v679_v26 }
 0x2f6   :  { %v406_v27 = vpop.xlane.xlu1 %405 }
 0x2f7   :  { %2191 = vrcp.f32 %v406_v27 }
 0x2f9   :  { %v2186_v28 = vpop.eup %2185 }
 0x2fa   :  { %v681_v29 = vmul.f32 %v2186_v28, %v2178_v9 }
 0x2fc   :  { %2051 = vmatprep.mubr.msk.f32.mxu0 %vm387_vm6, %v681_v29 }
 0x2fd   :  { %v2188_v30 = vpop.eup %2187 }
 0x2fe   :  { %v2190_v31 = vpop.eup %2189  ;;  %v408_v32 = vmul.f32 %v2188_v30, %v2180_v12 }
 0x2ff   :  { %v683_v33 = vmul.f32 %v2190_v31, %v2182_v14 }
 0x301   :  { %2052 = vmatmul.mubr.msk.f32.vlgmr.msra.gmra.mrb[8].mxu0 %vm387_vm6, %v683_v33  ;;  %v2192_v34 = vpop.eup %2191 }
 0x302   :  { %2147 = vmatpush3.bf16.msk.msra.mxu0 %vm2367_vm5, %v2354_v36  ;;  %2058 = vmatprep.mubr.msk.f32.mxu0 %vm387_vm6, %v408_v32  ;;  %v410_v37 = vmul.f32 %v2192_v34, %v2184_v18  ;;  %v1895_v36 = vld [vmem:[%s2534_s1 + $0x18] sm:$0x3] }
 0x303   :  { %2066 = vmatprep.subr.msk.mxu0 %vm39_vm0, %v2238_v0 }
 0x309   :  { %2059 = vmatmul.mubr.msk.f32.vlgmr.msra.gmra.mrb[8].mxu0 %vm387_vm6, %v410_v37 }
 0x30a   :  { %2067 = vmatpush3.msk.msra.mxu0 %vm39_vm0, %v2238_v0  ;;  %2068 = vmatprep.mubr.msk.f32.mxu0 %vm32_vm1, %v1894_v38  ;;  %v1897_v0 = vld [vmem:[%s2535_s2 + $0x18] sm:$0x3] }
 0x30b   :  { %2076 = vmatprep.subr.msk.mxu0 %vm39_vm0, %v2252_v3 }
 0x30d   :  { %2069 = vmatmul.mubr.msk.f32.vlgmr.msra.gmra.mrb[10].mxu0 %vm32_vm1, %v1895_v36 }
 0x30e   :  { %2077 = vmatpush3.msk.msra.mxu0 %vm39_vm0, %v2252_v3  ;;  %2078 = vmatprep.mubr.msk.f32.mxu0 %vm32_vm1, %v1896_v40  ;;  %v1892_v3 = vld [vmem:[%s2536_s0 + $0x10] sm:$0xff] }
 0x30f   :  { %2088 = vmatprep.subr.msk.mxu0 %vm39_vm0, %v2262_v5 }
 0x311   :  { %2079 = vmatmul.mubr.msk.f32.vlgmr.msra.gmra.mrb[12].mxu0 %vm32_vm1, %v1897_v0 }
 0x312   :  { %2089 = vmatpush3.msk.msra.mxu0 %vm39_vm0, %v2262_v5  ;;  %2090 = vmatprep.mubr.msk.f32.mxu0 %vm32_vm1, %v1892_v3 }
 0x313   :  { %2093 = vmatprep.subr.msk.mxu0 %vm39_vm0, %v2294_v10 }
 0x315   :  { %2091 = vmatmul.mubr.msk.f32.vlgmr.msra.gmra.mrb[14].mxu0 %vm32_vm1, %v1893_v41 }
 0x316   :  { %2094 = vmatpush3.msk.msra.mxu0 %vm39_vm0, %v2294_v10  ;;  %2095 = vmatprep.mubr.msk.f32.mxu0 %vm32_vm1, %v1896_v40 }
 0x319   :  { %2096 = vmatmul.mubr.msk.f32.vlgmr.msra.gmra.mrb[16].mxu0 %vm32_vm1, %v1897_v0 }
 0x3dc   :  { %v2060_v5 = vpop.f32.mrb[8].mxu0 }
 0x3dd   :  { %v844_v42 = vpop.f32.mrb[9].mxu0 }
 0x3de   :  { %2063 = vmatprep.mubr.msk.f32.mxu1 %vm32_vm1, %v844_v42 }
 0x3df   :  { %2064 = vmatmul.mubr.msk.f32.vlgmr.msra.gmra.mrb[6].mxu1 %vm32_vm1, %v2060_v5 }
 0x3e0   :  { %2072 = vmatpush3.msk.msra.mxu1 %vm39_vm0, %v2267_v6  ;;  %2073 = vmatprep.mubr.msk.f32.mxu1 %vm32_vm1, %v1892_v3  ;;  %v2070_v43 = vpop.f32.mrb[10].mxu0 }
 0x3e1   :  { %v1031_v44 = vadd.f32 %v2070_v43, %v2314_v15  ;;  %v1025_v45 = vpop.f32.mrb[11].mxu0 }
 0x3e2   :  { %v1026_v10 = vadd.f32 %v1025_v45, %v2314_v15 }
 0x3e3   :  { %2074 = vmatmul.mubr.msk.f32.vlgmr.msra.gmra.mrb[8].mxu1 %vm32_vm1, %v1893_v41 }
 0x3e4   :  { %v2148_v47 = vpack.c.bf16 %v1031_v44, %v1026_v10  ;;  %v2080_v6 = vpop.f32.mrb[12].mxu0 }
 0x3e5   :  { %v1205_v48 = vpop.f32.mrb[13].mxu0  ;;  %v1211_v49 = vadd.f32 %v2080_v6, %v2324_v21 }
 0x3e6   :  { %2150 = vmatprep.subr.msk.bf16.mxu1 %vm2332_vm2, %v2148_v47  ;;  %v1206_v51 = vadd.f32 %v1205_v48, %v2324_v21  ;;  %v1851_v21 = vld [vmem:[%s2533_s3 + $0x18] sm:$0xff] }
 0x3e7   :  { %2153 = vmatpush3.bf16.xpose.msk.msra.mxu1 %vm2332_vm2, %v2148_v47  ;;  %v2480_v58 = vrot.slane %v1851_v21, %v2308_v13 }
 0x3e8   :  { %2156 = vmatprep.subr.msk.bf16.mxu1 %vm2332_vm2, %v2148_v47  ;;  %v2092_v50 = vpop.f32.mrb[14].mxu0  ;;  %v2465_v53 = vpack.c.bf16 %v1211_v49, %v1206_v51 }
 0x3e9   :  { %v1400_v15 = vpop.f32.mrb[15].mxu0  ;;  %v1406_v4 = vadd.f32 %v2092_v50, %v2350_v35 }
 0x3ea   :  { %v1401_v63 = vadd.f32 %v1400_v15, %v2350_v35 }
 0x3ec   :  { %v2097_v52 = vpop.f32.mrb[16].mxu0 }
 0x3ed   :  { %v1488_v54 = vadd.f32 %v2097_v52, %v2358_v39  ;;  %v1482_v55 = vpop.f32.mrb[17].mxu0 }
 0x3ee   :  { %v1483_v56 = vadd.f32 %v1482_v55, %v2358_v39 }
 0x3f0   :  { %v2160_v57 = vpack.c.bf16 %v1488_v54, %v1483_v56 }
 0x3f2   :  { %2162 = vmatprep.subr.msk.bf16.mxu0 %vm2367_vm5, %v2160_v57 }
 0x3f3   :  { %2165 = vmatpush3.bf16.msk.msra.mxu0 %vm2367_vm5, %v2160_v57 }
 0x3f4   :  { %2168 = vmatprep.subr.msk.bf16.mxu0 %vm2367_vm5, %v2465_v53 }
 0x4b2   :  { %v2065_v59 = vpop.f32.mrb[6].mxu1 }
 0x4b3   :  { %v938_v39 = vadd.f32 %v2065_v59, %v2480_v58  ;;  %v932_v60 = vpop.f32.mrb[7].mxu1 }
 0x4b4   :  { %v933_v61 = vadd.f32 %v932_v60, %v2480_v58 }
 0x4b5   :  { %943 = vst.msk [vmem:[%s2537_s4 + $0x8] sm:$0x3] %vm942_vm8, %v938_v39 }
 0x4b6   :  { %941 = vst.msk [vmem:[%s2537_s4] sm:$0xff] %vm32_vm1, %v933_v61  ;;  %v2075_v62 = vpop.f32.mrb[8].mxu1 }
 0x4b7   :  { %v1117_v13 = vpop.f32.mrb[9].mxu1  ;;  %v1123_v2 = vadd.f32 %v2075_v62, %v2328_v23 }
 0x4b8   :  { %v1118_v1 = vadd.f32 %v1117_v13, %v2328_v23 }
 0x4ba   :  { %2085 = vmatprep.mubr.msk.f32.mxu1 %vm32_vm1, %v1118_v1 }
 0x4bb   :  { %2086 = vmatmul.mubr.msk.f32.vlgmr.msra.gmra.mrb[10].mxu1 %vm32_vm1, %v1123_v2 }
 0x4bc   :  { %2159 = vmatpush3.bf16.xpose.msk.msra.mxu1 %vm2332_vm2, %v2148_v47  ;;  %2102 = vmatprep.mubr.msk.f32.mxu1 %vm32_vm1, %v1401_v63 }
 0x4bd   :  { %2119 = vmatprep.subr.msk.mxu1 %vm39_vm0, %v2392_v20 }
 0x4c3   :  { %2103 = vmatmul.mubr.msk.f32.vlgmr.msra.gmra.mrb[12].mxu1 %vm32_vm1, %v1406_v4 }
 0x4c4   :  { %2120 = vmatpush3.msk.msra.mxu1 %vm39_vm0, %v2392_v20 }
 0x58e   :  { %v2087_v23 = vpop.f32.mrb[10].mxu1 }
 0x58f   :  { %v1292_v7 = vpop.f32.mrb[11].mxu1  ;;  %v1304_v12 = vsel %vm391_vm7, %v2087_v23, -inf }
 0x590   :  { %v1301_v35 = vsel %vm387_vm6, %v1292_v7, -inf }
 0x596   :  { %v2104_v8 = vpop.f32.mrb[12].mxu1 }
 0x597   :  { %v1563_v9 = vpop.f32.mrb[13].mxu1  ;;  %v1575_v11 = vsel %vm391_vm7, %v2104_v8, -inf }
 0x598   :  { %1576 = vmax.xlane.f32.xlu1 %v1575_v11  ;;  %v1572_v24 = vsel %vm387_vm6, %v1563_v9, -inf }
 0x599   :  { %1573 = vmax.xlane.f32.xlu0 %v1572_v24 }
 0x59c   :  { %1305 = vmax.xlane.f32.xlu1 %v1304_v12 }
 0x59d   :  { %1302 = vmax.xlane.f32.xlu0 %v1301_v35 }
 0x625   :  { %v1577_v14 = vpop.xlane.xlu1 %1576 }
 0x626   :  { %v1579_v16 = vsub.f32 %v2104_v8, %v1577_v14  ;;  %v1574_v17 = vpop.xlane.xlu0 %1573 }
 0x627   :  { %v1578_v18 = vsub.f32 %v1563_v9, %v1574_v17 }
 0x628   :  { %v1582_v19 = vmul.f32 1.442695, %v1579_v16 }
 0x629   :  { %v1580_v20 = vmul.f32 1.442695, %v1578_v18  ;;  %v1306_v22 = vpop.xlane.xlu1 %1305 }
 0x62a   :  { %2193 = vpow2.f32 %v1582_v19  ;;  %v1308_v25 = vsub.f32 %v2087_v23, %v1306_v22  ;;  %v1303_v26 = vpop.xlane.xlu0 %1302 }
 0x62b   :  { %2195 = vpow2.f32 %v1580_v20  ;;  %v1307_v27 = vsub.f32 %v1292_v7, %v1303_v26 }
 0x62c   :  { %v1311_v28 = vmul.f32 1.442695, %v1308_v25 }
 0x62d   :  { %v1309_v29 = vmul.f32 1.442695, %v1307_v27 }
 0x62e   :  { %2197 = vpow2.f32 %v1311_v28 }
 0x62f   :  { %2199 = vpow2.f32 %v1309_v29 }
 0x634   :  { %v2194_v30 = vpop.eup %2193 }
 0x635   :  { %v2196_v31 = vpop.eup %2195  ;;  %v1587_v32 = vsel %vm391_vm7, %v2194_v30, 0.0 }
 0x636   :  { %1588 = vadd.xlane.f32.xlu1 %v1587_v32  ;;  %v1584_v33 = vsel %vm387_vm6, %v2196_v31, 0.0 }
 0x637   :  { %1585 = vadd.xlane.f32.xlu0 %v1584_v33 }
 0x638   :  { %v2198_v34 = vpop.eup %2197 }
 0x639   :  { %v2200_v37 = vpop.eup %2199  ;;  %v1316_v38 = vsel %vm391_vm7, %v2198_v34, 0.0 }
 0x63a   :  { %1317 = vadd.xlane.f32.xlu1 %v1316_v38  ;;  %v1313_v36 = vsel %vm387_vm6, %v2200_v37, 0.0 }
 0x63b   :  { %1314 = vadd.xlane.f32.xlu0 %v1313_v36 }
 0x6c3   :  { %v1589_v40 = vpop.xlane.xlu1 %1588 }
 0x6c4   :  { %2201 = vrcp.f32 %v1589_v40  ;;  %v1586_v0 = vpop.xlane.xlu0 %1585 }
 0x6c5   :  { %2203 = vrcp.f32 %v1586_v0 }
 0x6c7   :  { %v1318_v41 = vpop.xlane.xlu1 %1317 }
 0x6c8   :  { %v1315_v3 = vpop.xlane.xlu0 %1314 }
 0x6c9   :  { %2205 = vrcp.f32 %v1315_v3 }
 0x6ca   :  { %2207 = vrcp.f32 %v1318_v41 }
 0x6ce   :  { %v2202_v5 = vpop.eup %2201 }
 0x6cf   :  { %v2204_v42 = vpop.eup %2203  ;;  %v1593_v44 = vmul.f32 %v2202_v5, %v2194_v30 }
 0x6d0   :  { %v1591_v43 = vmul.f32 %v2204_v42, %v2196_v31 }
 0x6d2   :  { %2109 = vmatprep.mubr.msk.f32.mxu0 %vm387_vm6, %v1591_v43 }
 0x6d3   :  { %v2206_v45 = vpop.eup %2205  ;;  %2110 = vmatmul.mubr.msk.f32.vlgmr.msra.gmra.mrb[18].mxu0 %vm387_vm6, %v1593_v44 }
 0x6d4   :  { %2171 = vmatpush3.bf16.msk.msra.mxu0 %vm2367_vm5, %v2465_v53  ;;  %v1320_v10 = vmul.f32 %v2206_v45, %v2200_v37  ;;  %v2208_v47 = vpop.eup %2207 }
 0x6d5   :  { %v1322_v6 = vmul.f32 %v2208_v47, %v2198_v34 }
 0x6d6   :  { %2116 = vmatprep.mubr.msk.f32.mxu0 %vm387_vm6, %v1320_v10 }
 0x6db   :  { %2117 = vmatmul.mubr.msk.f32.vlgmr.msra.gmra.mrb[18].mxu0 %vm387_vm6, %v1322_v6 }
 0x7ae   :  { %v2118_v48 = vpop.f32.mrb[18].mxu0 }
 0x7af   :  { %v1753_v49 = vpop.f32.mrb[19].mxu0 }
 0x7b0   :  { %2121 = vmatprep.mubr.msk.f32.mxu1 %vm32_vm1, %v1753_v49 }
 0x7b1   :  { %2122 = vmatmul.mubr.msk.f32.vlgmr.msra.gmra.mrb[14].mxu1 %vm32_vm1, %v2118_v48 }
 0x884   :  { %v2123_v50 = vpop.f32.mrb[14].mxu1 }
 0x885   :  { %v1840_v51 = vadd.f32 %v2123_v50, %v2480_v58  ;;  %v1834_v15 = vpop.f32.mrb[15].mxu1 }
 0x886   :  { %v1835_v46 = vadd.f32 %v1834_v15, %v2480_v58 }
 0x887   :  { %1939 = vst.msk [vmem:[%s2537_s4 + $0x18] sm:$0x3] %vm942_vm8, %v1840_v51 }
 0x888   :  { %1938 = vst.msk [vmem:[%s2537_s4 + $0x10] sm:$0xff] %vm32_vm1, %v1835_v46 }

</bundles_post_ra>
